<compile_context>
chip_gen: v7x
topology: tpu7x:2x2x1
jax: 0.10.0
libtpu: 0.0.40
codegen_flags: <defaults>
</compile_context>

<pallas_src>
import functools

import jax
import jax.numpy as jnp
from jax.experimental import pallas as pl
from jax.experimental.pallas import tpu as pltpu


# ---------------------------------------------------------------------------
# Per-generation planning
# ---------------------------------------------------------------------------
def _device_plan():
    """Tile-byte target, lane cap and scoped-VMEM limit per TPU generation."""
    try:
        kind = jax.devices()[0].device_kind.lower()
    except Exception:  # pragma: no cover - defensive only
        kind = ""
    if "v7" in kind:
        # 64 MiB physical VMEM, 3.2 TB/s HBM: bigger tiles, raise scoped limit.
        return dict(vmem_limit=48 * 1024 * 1024, tile_bytes=6 * 1024 * 1024, lane_cap=8192)
    if "v6" in kind:
        return dict(vmem_limit=64 * 1024 * 1024, tile_bytes=4 * 1024 * 1024, lane_cap=8192)
    if "v5" in kind or "v4" in kind:
        # ~820 GB/s: 2 MiB tiles already leave <10% per-step overhead.
        return dict(vmem_limit=64 * 1024 * 1024, tile_bytes=2 * 1024 * 1024, lane_cap=2048)
    return dict(vmem_limit=None, tile_bytes=4 * 1024 * 1024, lane_cap=4096)


def _compiler_params(dimension_semantics, plan):
    kw = dict(dimension_semantics=dimension_semantics)
    if plan["vmem_limit"] is not None:
        kw["vmem_limit_bytes"] = plan["vmem_limit"]
    return pltpu.CompilerParams(**kw)


# ---------------------------------------------------------------------------
# Tiling helpers
# ---------------------------------------------------------------------------
def _aligned_divisor(n, unit, max_tile):
    """Largest divisor of n that is a multiple of `unit` and <= max_tile, else None."""
    if unit > max_tile:
        return None
    t = (max_tile // unit) * unit
    while t >= unit:
        if n % t == 0:
            return t
        t -= unit
    return None


def _pick_row_tile(rows, sub_unit, max_rows):
    """Row (sublane) tile: full extent if it fits, else a unit-aligned divisor."""
    if rows <= max_rows:
        return rows
    units = (sub_unit,) if sub_unit == 8 else (sub_unit, 8)
    for unit in units:  # prefer native packing; 8 is always layout-legal
        t = _aligned_divisor(rows, unit, max_rows)
        if t is not None:
            return t
    # TODO(synk): pad/mask the row tail instead of a full-extent block for odd row counts.
    return rows


def _pick_pass1_tiles(B, C, HW, dsize, target_bytes):
    """(b_tile, hw_tile, acc_lanes) for the squeeze pass; block is (b_tile, C, hw_tile)."""
    if HW % 128 == 0:
        # Cap the lane tile at 4096 (keeps the in-kernel chunk unroll small while DMA
        # rows stay long/contiguous); grow the batch tile to reach the byte target.
        max_hw = max(128, min(4096, target_bytes // max(C * dsize, 1)))
        hw_tile = _aligned_divisor(HW, 128, max_hw) or HW
    else:
        # Small non-128-multiple extents take a single spatial step (large ones are
        # padded to a 128-multiple in the wrapper before we get here).
        hw_tile = HW
    acc_lanes = 128 if hw_tile % 128 == 0 else hw_tile
    max_b = max(1, target_bytes // max(C * hw_tile * dsize, 1))
    b_tile = _pick_row_tile(B, 8, max_b)  # multiple of 8 or B (output-block sublane rule)
    return b_tile, hw_tile, acc_lanes


def _pick_pass2_tiles(rows, hw, dtype, target_bytes, lane_cap):
    """(row_tile, lane_tile) for the scale pass; block is (row_tile, lane_tile)."""
    dsize = jnp.dtype(dtype).itemsize
    sub_unit = max(8, 32 // dsize)  # native sublane packing: 8 f32, 16 bf16, 32 int8/fp8
    if hw % 128 == 0:
        max_lane = max(128, min(lane_cap, target_bytes // max(sub_unit * dsize, 1)))
        lane_tile = _aligned_divisor(hw, 128, max_lane) or hw
    else:
        lane_tile = hw  # small extents only (large ones were padded); full dim is legal
    max_rows = max(sub_unit, target_bytes // max(lane_tile * dsize, 1))
    row_tile = _pick_row_tile(rows, sub_unit, max_rows)
    return row_tile, lane_tile


# ---------------------------------------------------------------------------
# Pass 1: squeeze (spatial mean) + excitation FCs  ->  s : (B, C) f32
# ---------------------------------------------------------------------------
def _squeeze_excite_kernel(f1_ref, w1_ref, w2_ref, s_ref, acc_ref, *, inv_hw, acc_lanes):
    # f1_ref : (b_tile, C, hw_tile) ; w1_ref: (C, mid) ; w2_ref: (mid, C)
    # s_ref  : (b_tile, C) f32 output (resident across the spatial reduction axis)
    # acc_ref: (b_tile, C, acc_lanes) f32 lane-aligned accumulator
    k = pl.program_id(1)

    @pl.when(k == 0)
    def _():
        acc_ref[...] = jnp.zeros_like(acc_ref)

    # Steady-state loop: pure element-wise VALU adds over static, 128-lane-aligned
    # chunks (whole vregs, no relayout); pairwise tree keeps the dependency chain short.
    hw_tile = f1_ref.shape[-1]
    n = hw_tile // acc_lanes
    chunks = [
        f1_ref[:, :, j * acc_lanes:(j + 1) * acc_lanes].astype(jnp.float32)
        for j in range(n)
    ]
    while len(chunks) > 1:
        nxt = [a + b for a, b in zip(chunks[0::2], chunks[1::2])]
        if len(chunks) % 2:
            nxt.append(chunks[-1])
        chunks = nxt
    acc_ref[...] += chunks[0]

    @pl.when(k == pl.num_programs(1) - 1)
    def _():
        # Single cross-lane (XLU) reduce per batch block, then both tiny FCs
        # batched over the block's batch rows (M = b_tile) on the MXU.
        avg = jnp.sum(acc_ref[...], axis=-1) * inv_hw                # (b_tile, C)
        w1 = w1_ref[...].astype(jnp.float32)                         # (C, mid)
        w2 = w2_ref[...].astype(jnp.float32)                         # (mid, C)
        h = jnp.maximum(jnp.dot(avg, w1, preferred_element_type=jnp.float32), 0.0)
        s = jnp.dot(h, w2, preferred_element_type=jnp.float32)       # (b_tile, C)
        s_ref[...] = jax.nn.sigmoid(s)


# ---------------------------------------------------------------------------
# Pass 2: pure broadcast-scale of feat2 by s (per (b, c) row)
# ---------------------------------------------------------------------------
def _scale_kernel(f2_ref, s_ref, o_ref):
    # f2_ref/o_ref: (row_tile, lane_tile) ; s_ref: (row_tile, 1) f32
    o_ref[...] = (f2_ref[...] * s_ref[...]).astype(o_ref.dtype)


# ---------------------------------------------------------------------------
# Wrapper
# ---------------------------------------------------------------------------
_LANE_PAD_THRESHOLD = 2048  # pad HW to a 128-multiple only when it is this large


@functools.partial(jax.jit, static_argnames=("H", "W"))
def se_layer(feat1, feat2, w1_t, w2_t, H, W):
    """feat1, feat2: (B, L, C); w1_t: (C, mid); w2_t: (mid, C). Returns (B, C, H, W)."""
    B, L, C = feat1.shape
    assert L == H * W
    HW = H * W
    mid = w1_t.shape[1]
    dsize = jnp.dtype(feat1.dtype).itemsize
    plan = _device_plan()

    # Large spatial extents that aren't 128-multiples get zero-padded columns so
    # every block stays lane-aligned and bounded (zeros don't change the sum;
    # padded output columns are sliced off at the end).
    HW_pad = HW
    if HW % 128 != 0 and HW > _LANE_PAD_THRESHOLD:
        HW_pad = ((HW + 127) // 128) * 128

    f1 = feat1.reshape(B, C, HW)   # zero-copy; matches torch .reshape(B, C, H, W)
    f2 = feat2.reshape(B, C, HW)
    if HW_pad != HW:
        pad = ((0, 0), (0, 0), (0, HW_pad - HW))
        f1 = jnp.pad(f1, pad)
        f2 = jnp.pad(f2, pad)

    # ---- Pass 1: s = sigmoid(relu(mean(f1) @ W1) @ W2), shape (B, C) ----
    b_tile, hw_tile1, acc_lanes = _pick_pass1_tiles(B, C, HW_pad, dsize, plan["tile_bytes"])
    s = pl.pallas_call(
        functools.partial(_squeeze_excite_kernel, inv_hw=1.0 / HW, acc_lanes=acc_lanes),
        out_shape=jax.ShapeDtypeStruct((B, C), jnp.float32),
        grid_spec=pltpu.PrefetchScalarGridSpec(
            num_scalar_prefetch=0,
            grid=(B // b_tile, HW_pad // hw_tile1),
            in_specs=[
                pl.BlockSpec((b_tile, C, hw_tile1), lambda b, k: (b, 0, k)),
                pl.BlockSpec((C, mid), lambda b, k: (0, 0)),
                pl.BlockSpec((mid, C), lambda b, k: (0, 0)),
            ],
            out_specs=pl.BlockSpec((b_tile, C), lambda b, k: (b, 0)),
            scratch_shapes=[pltpu.VMEM((b_tile, C, acc_lanes), jnp.float32)],
        ),
        compiler_params=_compiler_params(("parallel", "arbitrary"), plan),
    )(f1, w1_t, w2_t)

    # ---- Pass 2: out = f2 * s, tiled freely over (B*C) rows x HW lanes ----
    rows = B * C
    f2r = f2.reshape(rows, HW_pad)          # row r = (b, c); scale is constant per row
    s_rows = s.reshape(rows, 1)
    row_tile, lane_tile = _pick_pass2_tiles(rows, HW_pad, feat2.dtype,
                                            plan["tile_bytes"], plan["lane_cap"])
    out = pl.pallas_call(
        _scale_kernel,
        out_shape=jax.ShapeDtypeStruct((rows, HW_pad), feat2.dtype),
        grid_spec=pltpu.PrefetchScalarGridSpec(
            num_scalar_prefetch=0,
            grid=(rows // row_tile, HW_pad // lane_tile),
            in_specs=[
                pl.BlockSpec((row_tile, lane_tile), lambda r, h: (r, h)),
                pl.BlockSpec((row_tile, 1), lambda r, h: (r, 0)),
            ],
            out_specs=pl.BlockSpec((row_tile, lane_tile), lambda r, h: (r, h)),
        ),
        compiler_params=_compiler_params(("parallel", "parallel"), plan),
    )(f2r, s_rows)

    if HW_pad != HW:
        out = out[:, :HW]
    return out.reshape(B, C, H, W)


# ---------------------------------------------------------------------------
# Pure-JAX reference (matches the PyTorch module)
# ---------------------------------------------------------------------------
def _reference(feat1, feat2, w1_t, w2_t, H, W):
    B, L, C = feat1.shape
    f1 = feat1.reshape(B, C, H * W)
    f2 = feat2.reshape(B, C, H * W)
    avg = jnp.mean(f1.astype(jnp.float32), axis=-1)           # (B, C)
    h = jnp.maximum(avg @ w1_t.astype(jnp.float32), 0.0)      # (B, mid)
    s = jax.nn.sigmoid(h @ w2_t.astype(jnp.float32))          # (B, C)
    return (f2 * s[:, :, None]).astype(feat2.dtype).reshape(B, C, H, W)


if __name__ == "__main__":
    B, H, W = 2, 8, 8
    C, ratio = 32, 16                 # in_channel=32, ratio=16 -> mid=2
    mid = C // ratio
    L = H * W

    key = jax.random.PRNGKey(0)
    k1, k2, k3, k4 = jax.random.split(key, 4)
    feat1 = jax.random.normal(k1, (B, L, C), dtype=jnp.float32)
    feat2 = jax.random.normal(k2, (B, L, C), dtype=jnp.float32)
    # nn.Linear(C, mid, bias=False).weight is (mid, C); store transposed (C, mid)
    w1_t = (jax.random.normal(k3, (mid, C), dtype=jnp.float32) * 0.1).T
    # nn.Linear(mid, C, bias=False).weight is (C, mid); store transposed (mid, C)
    w2_t = (jax.random.normal(k4, (C, mid), dtype=jnp.float32) * 0.1).T

    out = se_layer(feat1, feat2, w1_t, w2_t, H, W)
    out = jax.block_until_ready(out)

    ref = _reference(feat1, feat2, w1_t, w2_t, H, W)
    assert out.shape == (B, C, H, W)
    assert jnp.allclose(out, ref, atol=1e-5, rtol=1e-5), "mismatch vs reference"
    print("KERNEL_OK")
</pallas_src>

<mosaic_0001>
module attributes {stable_mosaic.version = 11 : i64} {
  func.func @_squeeze_excite_kernel(%arg0: i32, %arg1: i32, %arg2: memref<2x32x64xf32, #tpu.memory_space<vmem>>, %arg3: memref<32x2xf32, #tpu.memory_space<vmem>>, %arg4: memref<2x32xf32, #tpu.memory_space<vmem>>, %arg5: memref<2x32xf32, #tpu.memory_space<vmem>>, %arg6: memref<2x32x64xf32, #tpu.memory_space<vmem>>) attributes {dimension_semantics = [#tpu.dimension_semantics<parallel>, #tpu.dimension_semantics<arbitrary>], iteration_bounds = array<i64: 1, 1>, scalar_prefetch = 0 : i64, scratch_operands = 1 : i64, tpu.core_type = #tpu.core_type<tc>, window_params = [{transform_indices = @transform_0, window_bounds = array<i64: 2, 32, 64>}, {pipeline_mode = #tpu.pipeline_mode<synchronous>, transform_indices = @transform_1, window_bounds = array<i64: 32, 2>}, {pipeline_mode = #tpu.pipeline_mode<synchronous>, transform_indices = @transform_2, window_bounds = array<i64: 2, 32>}, {transform_indices = @transform_3, window_bounds = array<i64: 2, 32>}]} {
    %c0_i32 = arith.constant 0 : i32
    %0 = arith.cmpi eq, %arg1, %c0_i32 : i32
    %1 = arith.extui %0 : i1 to i32
    %c0_i32_0 = arith.constant 0 : i32
    %2 = arith.cmpi ne, %1, %c0_i32_0 : i32
    scf.if %2 {
      %cst = arith.constant 0.000000e+00 : f32
      %10 = vector.broadcast %cst : f32 to vector<2x32x64xf32>
      %c0_11 = arith.constant 0 : index
      %c0_12 = arith.constant 0 : index
      %c0_13 = arith.constant 0 : index
      %11 = vector.load %arg6[%c0_11, %c0_12, %c0_13] : memref<2x32x64xf32, #tpu.memory_space<vmem>>, vector<2x32x64xf32>
      tpu.vector_store %arg6[%c0_11, %c0_12, %c0_13], %10 {strides = array<i32>} : memref<2x32x64xf32, #tpu.memory_space<vmem>>, vector<2x32x64xf32>,
    } else {
    }
    %c0 = arith.constant 0 : index
    %c0_1 = arith.constant 0 : index
    %c0_2 = arith.constant 0 : index
    %3 = vector.load %arg2[%c0, %c0_1, %c0_2] : memref<2x32x64xf32, #tpu.memory_space<vmem>>, vector<2x32x64xf32>
    %c0_3 = arith.constant 0 : index
    %c0_4 = arith.constant 0 : index
    %c0_5 = arith.constant 0 : index
    %4 = vector.load %arg6[%c0_3, %c0_4, %c0_5] : memref<2x32x64xf32, #tpu.memory_space<vmem>>, vector<2x32x64xf32>
    %5 = arith.addf %4, %3 : vector<2x32x64xf32>
    %c0_6 = arith.constant 0 : index
    %c0_7 = arith.constant 0 : index
    %c0_8 = arith.constant 0 : index
    %6 = vector.load %arg6[%c0_6, %c0_7, %c0_8] : memref<2x32x64xf32, #tpu.memory_space<vmem>>, vector<2x32x64xf32>
    tpu.vector_store %arg6[%c0_6, %c0_7, %c0_8], %5 {strides = array<i32>} : memref<2x32x64xf32, #tpu.memory_space<vmem>>, vector<2x32x64xf32>,
    %c0_i32_9 = arith.constant 0 : i32
    %7 = arith.cmpi eq, %arg1, %c0_i32_9 : i32
    %8 = arith.extui %7 : i1 to i32
    %c0_i32_10 = arith.constant 0 : i32
    %9 = arith.cmpi ne, %8, %c0_i32_10 : i32
    scf.if %9 {
      %c0_11 = arith.constant 0 : index
      %c0_12 = arith.constant 0 : index
      %c0_13 = arith.constant 0 : index
      %10 = vector.load %arg6[%c0_11, %c0_12, %c0_13] : memref<2x32x64xf32, #tpu.memory_space<vmem>>, vector<2x32x64xf32>
      %cst = arith.constant dense<0.000000e+00> : vector<2x32xf32>
      %11 = vector.multi_reduction <add>, %10, %cst [2] : vector<2x32x64xf32> to vector<2x32xf32>
      %cst_14 = arith.constant 1.562500e-02 : f32
      %12 = vector.broadcast %cst_14 : f32 to vector<2x32xf32>
      %13 = arith.mulf %11, %12 : vector<2x32xf32>
      %c0_15 = arith.constant 0 : index
      %c0_16 = arith.constant 0 : index
      %14 = vector.load %arg3[%c0_15, %c0_16] : memref<32x2xf32, #tpu.memory_space<vmem>>, vector<32x2xf32>
      %c0_17 = arith.constant 0 : index
      %c0_18 = arith.constant 0 : index
      %15 = vector.load %arg4[%c0_17, %c0_18] : memref<2x32xf32, #tpu.memory_space<vmem>>, vector<2x32xf32>
      %cst_19 = arith.constant dense<0.000000e+00> : vector<2x2xf32>
      %16 = tpu.matmul %13, %14, %cst_19 {dimension_numbers = #tpu.dot_dimension_numbers<[1], [0], [0], [1], [0, 0, 1, 1], [], []>} : vector<2x32xf32>, vector<32x2xf32>, vector<2x2xf32> -> vector<2x2xf32>
      %cst_20 = arith.constant 0.000000e+00 : f32
      %17 = vector.broadcast %cst_20 : f32 to vector<2x2xf32>
      %18 = arith.maximumf %16, %17 : vector<2x2xf32>
      %cst_21 = arith.constant dense<0.000000e+00> : vector<2x32xf32>
      %19 = tpu.matmul %18, %15, %cst_21 {dimension_numbers = #tpu.dot_dimension_numbers<[1], [0], [0], [1], [0, 0, 1, 1], [], []>} : vector<2x2xf32>, vector<2x32xf32>, vector<2x32xf32> -> vector<2x32xf32>
      %20 = arith.negf %19 : vector<2x32xf32>
      %21 = math.exp %20 : vector<2x32xf32>
      %cst_22 = arith.constant 1.000000e+00 : f32
      %22 = vector.broadcast %cst_22 : f32 to vector<2x32xf32>
      %23 = arith.addf %22, %21 : vector<2x32xf32>
      %24 = arith.divf %22, %23 : vector<2x32xf32>
      %c0_23 = arith.constant 0 : index
      %c0_24 = arith.constant 0 : index
      %25 = vector.load %arg5[%c0_23, %c0_24] : memref<2x32xf32, #tpu.memory_space<vmem>>, vector<2x32xf32>
      tpu.vector_store %arg5[%c0_23, %c0_24], %24 {strides = array<i32>} : memref<2x32xf32, #tpu.memory_space<vmem>>, vector<2x32xf32>,
    } else {
    }
    return
  }
  func.func @transform_0(%arg0: i32, %arg1: i32) -> (i32, i32, i32) {
    %c0_i32 = arith.constant 0 : i32
    %c0_i32_0 = arith.constant 0 : i32
    return %arg0, %c0_i32, %arg1 : i32, i32, i32
  }
  func.func @transform_1(%arg0: i32, %arg1: i32) -> (i32, i32) {
    %c0_i32 = arith.constant 0 : i32
    %c0_i32_0 = arith.constant 0 : i32
    %c0_i32_1 = arith.constant 0 : i32
    return %c0_i32, %c0_i32_0 : i32, i32
  }
  func.func @transform_2(%arg0: i32, %arg1: i32) -> (i32, i32) {
    %c0_i32 = arith.constant 0 : i32
    %c0_i32_0 = arith.constant 0 : i32
    %c0_i32_1 = arith.constant 0 : i32
    return %c0_i32, %c0_i32_0 : i32, i32
  }
  func.func @transform_3(%arg0: i32, %arg1: i32) -> (i32, i32) {
    %c0_i32 = arith.constant 0 : i32
    %c0_i32_0 = arith.constant 0 : i32
    return %arg0, %c0_i32 : i32, i32
  }
}

module attributes {stable_mosaic.version = 11 : i64} {
  func.func @_scale_kernel(%arg0: i32, %arg1: i32, %arg2: memref<64x64xf32, #tpu.memory_space<vmem>>, %arg3: memref<64x1xf32, #tpu.memory_space<vmem>>, %arg4: memref<64x64xf32, #tpu.memory_space<vmem>>) attributes {dimension_semantics = [#tpu.dimension_semantics<parallel>, #tpu.dimension_semantics<parallel>], iteration_bounds = array<i64: 1, 1>, scalar_prefetch = 0 : i64, scratch_operands = 0 : i64, tpu.core_type = #tpu.core_type<tc>, window_params = [{transform_indices = @transform_0, window_bounds = array<i64: 64, 64>}, {transform_indices = @transform_1, window_bounds = array<i64: 64, 1>}, {transform_indices = @transform_2, window_bounds = array<i64: 64, 64>}]} {
    %c0 = arith.constant 0 : index
    %c0_0 = arith.constant 0 : index
    %0 = vector.load %arg2[%c0, %c0_0] : memref<64x64xf32, #tpu.memory_space<vmem>>, vector<64x64xf32>
    %c0_1 = arith.constant 0 : index
    %c0_2 = arith.constant 0 : index
    %1 = vector.load %arg3[%c0_1, %c0_2] : memref<64x1xf32, #tpu.memory_space<vmem>>, vector<64x1xf32>
    %2 = vector.broadcast %1 : vector<64x1xf32> to vector<64x64xf32>
    %3 = arith.mulf %0, %2 : vector<64x64xf32>
    %c0_3 = arith.constant 0 : index
    %c0_4 = arith.constant 0 : index
    %4 = vector.load %arg4[%c0_3, %c0_4] : memref<64x64xf32, #tpu.memory_space<vmem>>, vector<64x64xf32>
    tpu.vector_store %arg4[%c0_3, %c0_4], %3 {strides = array<i32>} : memref<64x64xf32, #tpu.memory_space<vmem>>, vector<64x64xf32>,
    return
  }
  func.func @transform_0(%arg0: i32, %arg1: i32) -> (i32, i32) {
    %c0_i32 = arith.constant 0 : i32
    return %arg0, %arg1 : i32, i32
  }
  func.func @transform_1(%arg0: i32, %arg1: i32) -> (i32, i32) {
    %c0_i32 = arith.constant 0 : i32
    %c0_i32_0 = arith.constant 0 : i32
    return %arg0, %c0_i32 : i32, i32
  }
  func.func @transform_2(%arg0: i32, %arg1: i32) -> (i32, i32) {
    %c0_i32 = arith.constant 0 : i32
    return %arg0, %arg1 : i32, i32
  }
}

</mosaic_0001>

<bundles_post_ra>
// kernel: se_layer.3
= control target key start
LH: loop header
LB: loop body
LE: loop exit
PB: predicated region body
PF: predicated region fallthrough
CT: control target
= control target key end

     0   :  { %v91_v0 = vmov 0   ;;  %vm75_vm0 = vcmask 523264   ;;  %s187_s1 = inlined_call_operand.vmem [shape: f32[64,1], index: 1, kind: input, shape index: {}]   ;;  %s188_s0 = inlined_call_operand.vmem [shape: f32[64,64], index: 0, kind: input, shape index: {}]   ;;  %s189_s2 = inlined_call_operand.vmem [shape: f32[64,64], index: 2, kind: output, shape index: {}]  }
   0x1   :  { %90 = vset.pattern.permute.xlu1 %v91_v0  ;;  %89 = vset.pattern.permute.xlu0 %v91_v0  ;;  %v21_v1 = vld [vmem:[%s187_s1 + $0x10] sm:$0xff]  ;;  %v19_v2 = vld [vmem:[%s187_s1] sm:$0xff]  ;;  %v22_v3 = vld [vmem:[%s187_s1 + $0x18] sm:$0xff] }
   0x2   :  { %39 = vperm.xlu1 %90, %v21_v1   ;;  %29 = vperm.xlu0 %89, %v19_v2   ;;  %v20_v4 = vld [vmem:[%s187_s1 + $0x8] sm:$0xff]  ;;  %v23_v6 = vld [vmem:[%s187_s1 + $0x20] sm:$0xff]  ;;  %v26_v7 = vld [vmem:[%s187_s1 + $0x38] sm:$0xff] }
   0x3   :  { %v24_v5 = vld [vmem:[%s187_s1 + $0x28] sm:$0xff]  ;;  %v25_v8 = vld [vmem:[%s187_s1 + $0x30] sm:$0xff]  ;;  %v11_v10 = vld [vmem:[%s188_s0] sm:$0xff] }
   0x4   :  { %v13_v9 = vld [vmem:[%s188_s0 + $0x10] sm:$0xff]  ;;  %v14_v15 = vld [vmem:[%s188_s0 + $0x18] sm:$0xff]  ;;  %v12_v16 = vld [vmem:[%s188_s0 + $0x8] sm:$0xff] }
   0x5   :  { %v16_v21 = vld [vmem:[%s188_s0 + $0x28] sm:$0xff]  ;;  %v15_v22 = vld [vmem:[%s188_s0 + $0x20] sm:$0xff]  ;;  %v18_v27 = vld [vmem:[%s188_s0 + $0x38] sm:$0xff] }
   0x6   :  { %44 = vperm.xlu1 %90, %v22_v3   ;;  %34 = vperm.xlu0 %89, %v20_v4   ;;  %v17_v28 = vld [vmem:[%s188_s0 + $0x30] sm:$0xff] }
   0xa   :  { %54 = vperm.xlu1 %90, %v24_v5   ;;  %49 = vperm.xlu0 %89, %v23_v6  }
   0xe   :  { %64 = vperm.xlu1 %90, %v26_v7   ;;  %59 = vperm.xlu0 %89, %v25_v8  }
  0x81   :  { %v40_v11 = vpop.permute.xlu1 %39  ;;  %v30_v12 = vpop.permute.xlu0 %29 }
  0x82   :  { %v69_v13 = vmul.f32 %v40_v11, %v13_v9  ;;  %v67_v14 = vmul.f32 %v30_v12, %v11_v10 }
  0x84   :  { %78 = vst.msk [vmem:[%s189_s2 + $0x10] sm:$0xff] %vm75_vm0, %v69_v13  ;;  %76 = vst.msk [vmem:[%s189_s2] sm:$0xff] %vm75_vm0, %v67_v14 }
  0x85   :  { %v45_v17 = vpop.permute.xlu1 %44  ;;  %v35_v18 = vpop.permute.xlu0 %34 }
  0x86   :  { %v70_v19 = vmul.f32 %v45_v17, %v14_v15  ;;  %v68_v20 = vmul.f32 %v35_v18, %v12_v16 }
  0x88   :  { %79 = vst.msk [vmem:[%s189_s2 + $0x18] sm:$0xff] %vm75_vm0, %v70_v19  ;;  %77 = vst.msk [vmem:[%s189_s2 + $0x8] sm:$0xff] %vm75_vm0, %v68_v20 }
  0x89   :  { %v55_v23 = vpop.permute.xlu1 %54  ;;  %v50_v24 = vpop.permute.xlu0 %49 }
  0x8a   :  { %v72_v25 = vmul.f32 %v55_v23, %v16_v21  ;;  %v71_v26 = vmul.f32 %v50_v24, %v15_v22 }
  0x8c   :  { %81 = vst.msk [vmem:[%s189_s2 + $0x28] sm:$0xff] %vm75_vm0, %v72_v25  ;;  %80 = vst.msk [vmem:[%s189_s2 + $0x20] sm:$0xff] %vm75_vm0, %v71_v26 }
  0x8d   :  { %v65_v29 = vpop.permute.xlu1 %64  ;;  %v60_v30 = vpop.permute.xlu0 %59 }
  0x8e   :  { %v74_v31 = vmul.f32 %v65_v29, %v18_v27  ;;  %v73_v32 = vmul.f32 %v60_v30, %v17_v28 }
  0x90   :  { %83 = vst.msk [vmem:[%s189_s2 + $0x38] sm:$0xff] %vm75_vm0, %v74_v31  ;;  %82 = vst.msk [vmem:[%s189_s2 + $0x30] sm:$0xff] %vm75_vm0, %v73_v32 }

// kernel: se_layer.2
= control target key start
LH: loop header
LB: loop body
LE: loop exit
PB: predicated region body
PF: predicated region fallthrough
CT: control target
= control target key end

     0   :  { %vm18_vm0 = vcmask 523264   ;;  %v368_v0 = vmov 0.0   ;;  %v369_v44 = vmov 0.0|0.0   ;;  %vm370_vm1 = vmmov 0   ;;  %s470_s0 = inlined_call_operand.vmem [shape: f32[2,32,64], index: 0, kind: input, shape index: {}]   ;;  %s471_s1 = inlined_call_operand.vmem [shape: f32[32,2], index: 1, kind: input, shape index: {}]   ;;  %s472_s2 = inlined_call_operand.vmem [shape: f32[2,32], index: 2, kind: input, shape index: {}]   ;;  %s473_s3 = inlined_call_operand.vmem [shape: f32[2,32], index: 3, kind: output, shape index: {}]  }
   0x1   :  { %23 = vst.msk [vmem:[#allocation2 + $0x20] sm:$0xff] %vm18_vm0, %v368_v0  ;;  %19 = vst.msk [vmem:[#allocation2] sm:$0xff] %vm18_vm0, %v368_v0  ;;  %350 = vmatprep.subr.mxu1 %v368_v0  ;;  %v31_v1 = vld [vmem:[%s470_s0 + $0x20] sm:$0xff]  ;;  %v32_v3 = vld [vmem:[%s470_s0 + $0x28] sm:$0xff]  ;;  %355 = vmatprep.subr.bf16.mxu0 %v369_v44  ;;  %v116_v48 = vlaneseq  ;;  %vm127_vm2 = vcmask 130112   ;;  %vm134_vm3 = vcmask 195712  }
   0x2   :  { %20 = vst.msk [vmem:[#allocation2 + $0x8] sm:$0xff] %vm18_vm0, %v368_v0  ;;  %21 = vst.msk [vmem:[#allocation2 + $0x10] sm:$0xff] %vm18_vm0, %v368_v0  ;;  %v27_v2 = vld [vmem:[%s470_s0] sm:$0xff]  ;;  %v28_v4 = vld [vmem:[%s470_s0 + $0x8] sm:$0xff]  ;;  %347 = vmatprep.mubr.msk.f32.mxu0 %vm370_vm1, %v368_v0  ;;  %352 = vmatprep.mubr.msk.f32.mxu1 %vm370_vm1, %v368_v0  ;;  %vm141_vm4 = vcmask 261312   ;;  %vm162_vm5 = vcmask 1041409  }
   0x3   :  { %22 = vst.msk [vmem:[#allocation2 + $0x18] sm:$0xff] %vm18_vm0, %v368_v0  ;;  %24 = vst.msk [vmem:[#allocation2 + $0x28] sm:$0xff] %vm18_vm0, %v368_v0  ;;  %v33_v5 = vld [vmem:[%s470_s0 + $0x30] sm:$0xff]  ;;  %v34_v7 = vld [vmem:[%s470_s0 + $0x38] sm:$0xff]  ;;  %v117_v51 = vand.u32 127, %v116_v48  ;;  %v119_v53 = vshrl.u32 %v116_v48, 7 }
   0x4   :  { %25 = vst.msk [vmem:[#allocation2 + $0x30] sm:$0xff] %vm18_vm0, %v368_v0  ;;  %26 = vst.msk [vmem:[#allocation2 + $0x38] sm:$0xff] %vm18_vm0, %v368_v0  ;;  %v29_v6 = vld [vmem:[%s470_s0 + $0x10] sm:$0xff]  ;;  %v30_v8 = vld [vmem:[%s470_s0 + $0x18] sm:$0xff]  ;;  %vm164_vm6 = vcmask 261120   ;;  %vm242_vm7 = vcmask 1041408  }
   0x5   :  { %v103_v41 = vld [vmem:[%s471_s1] sm:$0xff]  ;;  %v104_v42 = vld [vmem:[%s471_s1 + $0x8] sm:$0xff]  ;;  %v105_v45 = vld [vmem:[%s471_s1 + $0x10] sm:$0xff]  ;;  %v122_v52 = vadd.s32 4294967288, %v117_v51  ;;  %v129_v56 = vadd.s32 4294967280, %v117_v51  ;;  %v136_v60 = vadd.s32 4294967272, %v117_v51  ;;  %v120_v61 = vsub.s32 %v117_v51, %v119_v53 }
   0x6   :  { %v356_v43 = vpack.c.bf16 %v104_v42, %v103_v41  ;;  %v106_v46 = vld [vmem:[%s471_s1 + $0x18] sm:$0xff]  ;;  %vm238_vm8 = vcmask 15360   ;;  %vm322_vm9 = vcmask 254976  }
   0x7   :  { %v359_v47 = vpack.c.bf16 %v106_v46, %v105_v45  ;;  %v125_v57 = vsub.s32 %v122_v52, %v119_v53  ;;  %v132_v62 = vsub.s32 %v129_v56, %v119_v53 }
   0x8   :  { %v39_v9 = vld [vmem:[#allocation2 + $0x20] sm:$0xff]  ;;  %357 = vmatpush3.bf16.msra.mxu0 %v356_v43 }
   0x9   :  { %v35_v10 = vld [vmem:[#allocation2] sm:$0xff]  ;;  %v47_v12 = vadd.f32 %v39_v9, %v31_v1  ;;  %v36_v15 = vld [vmem:[#allocation2 + $0x8] sm:$0xff]  ;;  %v37_v17 = vld [vmem:[#allocation2 + $0x10] sm:$0xff]  ;;  %358 = vmatprep.subr.bf16.mxu0 %v369_v44 }
   0xa   :  { %v40_v11 = vld [vmem:[#allocation2 + $0x28] sm:$0xff]  ;;  %v43_v13 = vadd.f32 %v35_v10, %v27_v2  ;;  %v44_v18 = vadd.f32 %v36_v15, %v28_v4  ;;  %v45_v20 = vadd.f32 %v37_v17, %v29_v6  ;;  %v38_v22 = vld [vmem:[#allocation2 + $0x18] sm:$0xff] }
   0xb   :  { %v48_v14 = vadd.f32 %v40_v11, %v32_v3  ;;  %v41_v16 = vld [vmem:[#allocation2 + $0x30] sm:$0xff]  ;;  %v42_v21 = vld [vmem:[#allocation2 + $0x38] sm:$0xff]  ;;  %56 = vst.msk [vmem:[#allocation2 + $0x20] sm:$0xff] %vm18_vm0, %v47_v12  ;;  %v46_v24 = vadd.f32 %v38_v22, %v30_v8 }
   0xc   :  { %v49_v19 = vadd.f32 %v41_v16, %v33_v5  ;;  %52 = vst.msk [vmem:[#allocation2] sm:$0xff] %vm18_vm0, %v43_v13  ;;  %v50_v23 = vadd.f32 %v42_v21, %v34_v7  ;;  %53 = vst.msk [vmem:[#allocation2 + $0x8] sm:$0xff] %vm18_vm0, %v44_v18  ;;  %360 = vmatpush3.bf16.msra.mxu0 %v359_v47  ;;  %v139_v7 = vsub.s32 %v136_v60, %v119_v53 }
   0xd   :  { %57 = vst.msk [vmem:[#allocation2 + $0x28] sm:$0xff] %vm18_vm0, %v48_v14  ;;  %54 = vst.msk [vmem:[#allocation2 + $0x10] sm:$0xff] %vm18_vm0, %v45_v20 }
   0xe   :  { %58 = vst.msk [vmem:[#allocation2 + $0x30] sm:$0xff] %vm18_vm0, %v49_v19  ;;  %59 = vst.msk [vmem:[#allocation2 + $0x38] sm:$0xff] %vm18_vm0, %v50_v23 }
   0xf   :  { %55 = vst.msk [vmem:[#allocation2 + $0x18] sm:$0xff] %vm18_vm0, %v46_v24 }
  0x12   :  { %v67_v25 = vld [vmem:[#allocation2 + $0x20] sm:$0xff] }
  0x13   :  { %v63_v26 = vld [vmem:[#allocation2] sm:$0xff]  ;;  %v83_v28 = vsel %vm18_vm0, %v67_v25, 0.0  ;;  %v64_v30 = vld [vmem:[#allocation2 + $0x8] sm:$0xff] }
  0x14   :  { %v68_v27 = vld [vmem:[#allocation2 + $0x28] sm:$0xff]  ;;  %v71_v29 = vsel %vm18_vm0, %v63_v26, 0.0  ;;  %84 = vadd.xlane.f32.xlu1 %v83_v28  ;;  %v74_v32 = vsel %vm18_vm0, %v64_v30, 0.0  ;;  %v65_v34 = vld [vmem:[#allocation2 + $0x10] sm:$0xff]  ;;  %v107_v25 = vld [vmem:[%s472_s2] sm:$0x3] }
  0x15   :  { %72 = vadd.xlane.f32.xlu0 %v71_v29  ;;  %v86_v31 = vsel %vm18_vm0, %v68_v27, 0.0  ;;  %v69_v33 = vld [vmem:[#allocation2 + $0x30] sm:$0xff]  ;;  %v77_v36 = vsel %vm18_vm0, %v65_v34, 0.0  ;;  %v70_v37 = vld [vmem:[#allocation2 + $0x38] sm:$0xff]  ;;  %351 = vmatpush3.msk.msra.mxu1 %vm242_vm7, %v107_v25 }
  0x16   :  { %v89_v35 = vsel %vm18_vm0, %v69_v33, 0.0  ;;  %v66_v38 = vld [vmem:[#allocation2 + $0x18] sm:$0xff]  ;;  %v92_v39 = vsel %vm18_vm0, %v70_v37, 0.0 }
  0x17   :  { %v80_v40 = vsel %vm18_vm0, %v66_v38, 0.0 }
  0x18   :  { %87 = vadd.xlane.f32.xlu1 %v86_v31 }
  0x19   :  { %75 = vadd.xlane.f32.xlu0 %v74_v32 }
  0x1c   :  { %90 = vadd.xlane.f32.xlu1 %v89_v35 }
  0x1d   :  { %78 = vadd.xlane.f32.xlu0 %v77_v36 }
  0x20   :  { %93 = vadd.xlane.f32.xlu1 %v92_v39 }
  0x21   :  { %81 = vadd.xlane.f32.xlu0 %v80_v40 }
  0xa1   :  { %v85_v49 = vpop.xlane.xlu1 %84 }
  0xa2   :  { %v73_v50 = vpop.xlane.xlu0 %72  ;;  %v99_v2 = vmul.f32 0.015625, %v85_v49 }
  0xa3   :  { %v95_v3 = vmul.f32 0.015625, %v73_v50 }
  0xa4   :  { %v146_v12 = vrot.slane %v99_v2, %v120_v61 }
  0xa5   :  { %v88_v54 = vpop.xlane.xlu1 %87  ;;  %v121_v13 = vrot.slane %v95_v3, %v120_v61 }
  0xa6   :  { %v76_v55 = vpop.xlane.xlu0 %75  ;;  %v100_v58 = vmul.f32 0.015625, %v88_v54 }
  0xa7   :  { %v96_v59 = vmul.f32 0.015625, %v76_v55 }
  0xa8   :  { %v150_v5 = vrot.slane %v100_v58, %v125_v57 }
  0xa9   :  { %v91_v63 = vpop.xlane.xlu1 %90  ;;  %v126_v6 = vrot.slane %v96_v59, %v125_v57 }
  0xaa   :  { %v79_v1 = vpop.xlane.xlu0 %78  ;;  %v101_v0 = vmul.f32 0.015625, %v91_v63  ;;  %v151_v16 = vsel %vm127_vm2, %v150_v5, %v146_v12 }
  0xab   :  { %v97_v4 = vmul.f32 0.015625, %v79_v1  ;;  %v128_v17 = vsel %vm127_vm2, %v126_v6, %v121_v13 }
  0xac   :  { %v155_v8 = vrot.slane %v101_v0, %v132_v62 }
  0xad   :  { %v133_v9 = vrot.slane %v97_v4, %v132_v62  ;;  %v94_v10 = vpop.xlane.xlu1 %93 }
  0xae   :  { %v82_v11 = vpop.xlane.xlu0 %81  ;;  %v102_v14 = vmul.f32 0.015625, %v94_v10  ;;  %v156_v20 = vsel %vm134_vm3, %v155_v8, %v151_v16 }
  0xaf   :  { %v98_v15 = vmul.f32 0.015625, %v82_v11  ;;  %v135_v21 = vsel %vm134_vm3, %v133_v9, %v128_v17 }
  0xb0   :  { %v160_v18 = vrot.slane %v102_v14, %v139_v7 }
  0xb1   :  { %v140_v19 = vrot.slane %v98_v15, %v139_v7 }
  0xb2   :  { %v161_v23 = vsel %vm141_vm4, %v160_v18, %v156_v20 }
  0xb3   :  { %v142_v22 = vsel %vm141_vm4, %v140_v19, %v135_v21 }
  0xb4   :  { %v163_v24 = vsel %vm162_vm5, %v161_v23, %v142_v22 }
  0xb5   :  { %348 = vmatmul.mubr.msk.f32.vlgmr.msra.gmra.mrb[0].mxu0 %vm164_vm6, %v163_v24 }
 0x188   :  { %v233_v26 = vpop.f32.mrb[0].mxu0 }
 0x189   :  { %v237_v27 = vmax.f32 %v233_v26, 0.0  ;;  %v349_v28 = vpop.f32.mrb[1].mxu0 }
 0x18b   :  { %353 = vmatmul.mubr.msk.f32.vlgmr.msra.gmra.mrb[0].mxu1 %vm238_vm8, %v237_v27 }
 0x25e   :  { %v312_v29 = vpop.f32.mrb[0].mxu1 }
 0x25f   :  { %v331_v30 = vmul.f32 -1.442695, %v312_v29  ;;  %v354_v31 = vpop.f32.mrb[1].mxu1 }
 0x261   :  { %364 = vpow2.f32 %v331_v30 }
 0x26b   :  { %v365_v32 = vpop.eup %364 }
 0x26c   :  { %v319_v33 = vadd.f32 1.0, %v365_v32 }
 0x26e   :  { %366 = vrcp.f32 %v319_v33 }
 0x278   :  { %v367_v34 = vpop.eup %366 }
 0x279   :  { %323 = vst.msk [vmem:[%s473_s3] sm:$0x3] %vm322_vm9, %v367_v34 }

</bundles_post_ra>
